<compile_context>
chip_gen: v5e
topology: v5e:2x2
jax: 0.10.0
libtpu: 0.0.40
codegen_flags: <defaults>
</compile_context>

<pallas_src>
import jax
import jax.numpy as jnp
from jax.experimental import pallas as pl
from jax.experimental.pallas import tpu as pltpu

KERNEL_SIZE = 7
HALO = KERNEL_SIZE - 1        # 6
LANE = 128                    # vreg lane width; halo width
SUBLANES = 8                  # f32 sublane group
MAX_COLS = 2048               # lanes per row (multiple of 128)
MAX_ROW_TILE = 128            # rows per grid step cap (multiple of 8)


def _round_up(a, b):
    return ((a + b - 1) // b) * b


def _conv1d_sigmoid_kernel(w_ref, b_ref, main_ref, halo_ref, o_ref):
    # w_ref: SMEM (7,) f32 (scalar prefetch)   b_ref: SMEM (1,) f32
    # main_ref: VMEM (row_tile, cols) f32      halo_ref: VMEM (row_tile, 128) f32
    # o_ref:    VMEM (row_tile, cols) f32
    cols = o_ref.shape[1]
    width = cols + LANE

    # Merge main + halo in VMEM (lane-concat of the tile only).
    x = jnp.concatenate([main_ref[...], halo_ref[...]], axis=1)   # (rt, cols+128)

    # Tap 0 fused with the bias (no zero-init, no separate bias add).
    acc = w_ref[0] * x[:, :cols] + b_ref[0]

    # Remaining taps on the XLU: roll(x, width - k, axis=1) gives
    # shifted[:, i] = x[:, (i + k) mod width]; wrap-around only touches lanes
    # i >= width - k > cols, which the [:, :cols] slice drops, so it is exact.
    for k in range(1, KERNEL_SIZE):               # static unroll (6 taps)
        shifted = pltpu.roll(x, shift=width - k, axis=1)
        acc = acc + w_ref[k] * shifted[:, :cols]

    # Sigmoid: exp on the EUP; exact reciprocal keeps the 1e-5 tolerance.
    o_ref[...] = 1.0 / (1.0 + jnp.exp(-acc))


def conv1d_sigmoid(main, halo, weight, bias, row_tile):
    """main: (rows_pad, cols), halo: (rows_pad, 128) -> (rows_pad, cols) f32."""
    rows_pad, cols = main.shape
    assert rows_pad % row_tile == 0 and row_tile % SUBLANES == 0
    assert cols % LANE == 0 and halo.shape == (rows_pad, LANE)
    grid = (rows_pad // row_tile,)
    return pl.pallas_call(
        _conv1d_sigmoid_kernel,
        out_shape=jax.ShapeDtypeStruct((rows_pad, cols), jnp.float32),
        grid_spec=pltpu.PrefetchScalarGridSpec(
            num_scalar_prefetch=2,                        # weight, bias -> SMEM
            grid=grid,
            in_specs=[
                pl.BlockSpec((row_tile, cols), lambda r, w, b: (r, 0)),
                pl.BlockSpec((row_tile, LANE), lambda r, w, b: (r, 0)),
            ],
            out_specs=pl.BlockSpec((row_tile, cols), lambda r, w, b: (r, 0)),
        ),
        compiler_params=pltpu.CompilerParams(
            dimension_semantics=("parallel",),   # v7x: shard row tiles over 2 TCs
            vmem_limit_bytes=32 * 1024 * 1024,   # ~1 MiB blocks, fits all gens
        ),
    )(weight, bias, main, halo)


def _mod_forward_impl(x, weight, bias):
    """Reproduces Mod.forward.

    x: (1, L, 1) float32 (B must be 1 — PyTorch's squeeze(0) requires it).
    Returns: (L - 6,) float32.
    """
    B, L, C = x.shape
    assert B == 1 and C == 1, "Mod.forward's squeeze(0) semantics require B == 1, C == 1"
    L_out = L - HALO
    assert L_out >= 1, "need L >= 7"

    seq = x.reshape(L).astype(jnp.float32)

    # Layout: row r holds seq[r*cols : (r+1)*cols]; its 128-lane halo is the
    # first 128 lanes of row r+1.  cols multiple of 128, rows padded to the
    # row tile, so every kernel access is an unmasked full-vreg op.
    cols = min(MAX_COLS, _round_up(L_out, LANE))
    rows = -(-L_out // cols)
    rows8 = _round_up(rows, SUBLANES)
    if rows8 <= SUBLANES:
        row_tile = SUBLANES
    else:
        # Aim for >= 2 grid steps (v7x dual-TC sharding), capped at MAX_ROW_TILE.
        row_tile = min(MAX_ROW_TILE, _round_up(-(-rows8 // 2), SUBLANES))
    rows_pad = _round_up(rows8, row_tile)

    # One pad + one reshape; main/halo are views of the same buffer.
    total = (rows_pad + 1) * cols
    padded = jnp.pad(seq, (0, total - L)).reshape(rows_pad + 1, cols)
    main = padded[:rows_pad]                       # (rows_pad, cols)
    halo = padded[1:, :LANE]                       # (rows_pad, 128)

    y_slab = conv1d_sigmoid(
        main, halo, weight.astype(jnp.float32), bias.astype(jnp.float32), row_tile
    )                                              # (rows_pad, cols)
    # Only the first L_out positions (row-major) are real outputs; the rest
    # were computed over padding/halo and are dropped here (fused under jit).
    return y_slab.reshape(-1)[:L_out]


mod_forward = jax.jit(_mod_forward_impl)


if __name__ == "__main__":
    key = jax.random.PRNGKey(0)
    k_x, k_w, k_b = jax.random.split(key, 3)

    B, L, C = 1, 64, 1
    x = jax.random.normal(k_x, (B, L, C), dtype=jnp.float32)

    # Deterministic Conv1d(1, 1, 7) params: PyTorch-style uniform(-bound, bound)
    # with bound = 1/sqrt(in_channels * kernel_size).
    bound = 1.0 / (1 * KERNEL_SIZE) ** 0.5
    weight = jax.random.uniform(k_w, (KERNEL_SIZE,), jnp.float32, -bound, bound)
    bias = jax.random.uniform(k_b, (1,), jnp.float32, -bound, bound)

    out = jax.block_until_ready(mod_forward(x, weight, bias))
    assert out.shape == (L - KERNEL_SIZE + 1,), out.shape

    # Reference check in plain JAX (cross-correlation == PyTorch Conv1d).
    x_row = x.reshape(-1)
    ref = jax.nn.sigmoid(
        jnp.convolve(x_row, weight[::-1], mode="valid") + bias[0]
    )
    assert jnp.allclose(out, ref, atol=1e-5), (out, ref)

    print("KERNEL_OK")
</pallas_src>

<mosaic_0001>
module attributes {stable_mosaic.version = 11 : i64} {
  func.func @_conv1d_sigmoid_kernel(%arg0: i32, %arg1: memref<7xf32, #tpu.memory_space<smem>>, %arg2: memref<1xf32, #tpu.memory_space<smem>>, %arg3: memref<8x128xf32, #tpu.memory_space<vmem>>, %arg4: memref<8x128xf32, #tpu.memory_space<vmem>>, %arg5: memref<8x128xf32, #tpu.memory_space<vmem>>) attributes {dimension_semantics = [#tpu.dimension_semantics<parallel>], iteration_bounds = array<i64: 1>, scalar_prefetch = 2 : i64, scratch_operands = 0 : i64, tpu.core_type = #tpu.core_type<tc>, window_params = [{transform_indices = @transform_0, window_bounds = array<i64: 8, 128>}, {transform_indices = @transform_1, window_bounds = array<i64: 8, 128>}, {transform_indices = @transform_2, window_bounds = array<i64: 8, 128>}]} {
    %c0 = arith.constant 0 : index
    %c0_0 = arith.constant 0 : index
    %0 = vector.load %arg3[%c0, %c0_0] : memref<8x128xf32, #tpu.memory_space<vmem>>, vector<8x128xf32>
    %c0_1 = arith.constant 0 : index
    %c0_2 = arith.constant 0 : index
    %1 = vector.load %arg4[%c0_1, %c0_2] : memref<8x128xf32, #tpu.memory_space<vmem>>, vector<8x128xf32>
    %2 = tpu.concatenate %0, %1 in 1 : vector<8x128xf32>, vector<8x128xf32> -> vector<8x256xf32>
    %c0_3 = arith.constant 0 : index
    %3 = memref.load %arg1[%c0_3] : memref<7xf32, #tpu.memory_space<smem>>
    %4 = vector.extract_strided_slice %2 {offsets = [0, 0], sizes = [8, 128], strides = [1, 1]} : vector<8x256xf32> to vector<8x128xf32>
    %5 = vector.broadcast %3 : f32 to vector<8x128xf32>
    %6 = arith.mulf %5, %4 : vector<8x128xf32>
    %c0_4 = arith.constant 0 : index
    %7 = memref.load %arg2[%c0_4] : memref<1xf32, #tpu.memory_space<smem>>
    %8 = vector.broadcast %7 : f32 to vector<8x128xf32>
    %9 = arith.addf %6, %8 : vector<8x128xf32>
    %c255_i32 = arith.constant 255 : i32
    %10 = tpu.dynamic_rotate %2 by %c255_i32 dim 1 : vector<8x256xf32>, i32 -> vector<8x256xf32>
    %c1 = arith.constant 1 : index
    %11 = memref.load %arg1[%c1] : memref<7xf32, #tpu.memory_space<smem>>
    %12 = vector.extract_strided_slice %10 {offsets = [0, 0], sizes = [8, 128], strides = [1, 1]} : vector<8x256xf32> to vector<8x128xf32>
    %13 = vector.broadcast %11 : f32 to vector<8x128xf32>
    %14 = arith.mulf %13, %12 : vector<8x128xf32>
    %15 = arith.addf %9, %14 : vector<8x128xf32>
    %c254_i32 = arith.constant 254 : i32
    %16 = tpu.dynamic_rotate %2 by %c254_i32 dim 1 : vector<8x256xf32>, i32 -> vector<8x256xf32>
    %c2 = arith.constant 2 : index
    %17 = memref.load %arg1[%c2] : memref<7xf32, #tpu.memory_space<smem>>
    %18 = vector.extract_strided_slice %16 {offsets = [0, 0], sizes = [8, 128], strides = [1, 1]} : vector<8x256xf32> to vector<8x128xf32>
    %19 = vector.broadcast %17 : f32 to vector<8x128xf32>
    %20 = arith.mulf %19, %18 : vector<8x128xf32>
    %21 = arith.addf %15, %20 : vector<8x128xf32>
    %c253_i32 = arith.constant 253 : i32
    %22 = tpu.dynamic_rotate %2 by %c253_i32 dim 1 : vector<8x256xf32>, i32 -> vector<8x256xf32>
    %c3 = arith.constant 3 : index
    %23 = memref.load %arg1[%c3] : memref<7xf32, #tpu.memory_space<smem>>
    %24 = vector.extract_strided_slice %22 {offsets = [0, 0], sizes = [8, 128], strides = [1, 1]} : vector<8x256xf32> to vector<8x128xf32>
    %25 = vector.broadcast %23 : f32 to vector<8x128xf32>
    %26 = arith.mulf %25, %24 : vector<8x128xf32>
    %27 = arith.addf %21, %26 : vector<8x128xf32>
    %c252_i32 = arith.constant 252 : i32
    %28 = tpu.dynamic_rotate %2 by %c252_i32 dim 1 : vector<8x256xf32>, i32 -> vector<8x256xf32>
    %c4 = arith.constant 4 : index
    %29 = memref.load %arg1[%c4] : memref<7xf32, #tpu.memory_space<smem>>
    %30 = vector.extract_strided_slice %28 {offsets = [0, 0], sizes = [8, 128], strides = [1, 1]} : vector<8x256xf32> to vector<8x128xf32>
    %31 = vector.broadcast %29 : f32 to vector<8x128xf32>
    %32 = arith.mulf %31, %30 : vector<8x128xf32>
    %33 = arith.addf %27, %32 : vector<8x128xf32>
    %c251_i32 = arith.constant 251 : i32
    %34 = tpu.dynamic_rotate %2 by %c251_i32 dim 1 : vector<8x256xf32>, i32 -> vector<8x256xf32>
    %c5 = arith.constant 5 : index
    %35 = memref.load %arg1[%c5] : memref<7xf32, #tpu.memory_space<smem>>
    %36 = vector.extract_strided_slice %34 {offsets = [0, 0], sizes = [8, 128], strides = [1, 1]} : vector<8x256xf32> to vector<8x128xf32>
    %37 = vector.broadcast %35 : f32 to vector<8x128xf32>
    %38 = arith.mulf %37, %36 : vector<8x128xf32>
    %39 = arith.addf %33, %38 : vector<8x128xf32>
    %c250_i32 = arith.constant 250 : i32
    %40 = tpu.dynamic_rotate %2 by %c250_i32 dim 1 : vector<8x256xf32>, i32 -> vector<8x256xf32>
    %c6 = arith.constant 6 : index
    %41 = memref.load %arg1[%c6] : memref<7xf32, #tpu.memory_space<smem>>
    %42 = vector.extract_strided_slice %40 {offsets = [0, 0], sizes = [8, 128], strides = [1, 1]} : vector<8x256xf32> to vector<8x128xf32>
    %43 = vector.broadcast %41 : f32 to vector<8x128xf32>
    %44 = arith.mulf %43, %42 : vector<8x128xf32>
    %45 = arith.addf %39, %44 : vector<8x128xf32>
    %cst = arith.constant 0.000000e+00 : f32
    %46 = vector.broadcast %cst : f32 to vector<8x128xf32>
    %47 = arith.subf %46, %45 : vector<8x128xf32>
    %48 = math.exp %47 : vector<8x128xf32>
    %cst_5 = arith.constant 1.000000e+00 : f32
    %49 = vector.broadcast %cst_5 : f32 to vector<8x128xf32>
    %50 = arith.addf %49, %48 : vector<8x128xf32>
    %cst_6 = arith.constant 1.000000e+00 : f32
    %51 = vector.broadcast %cst_6 : f32 to vector<8x128xf32>
    %52 = arith.divf %51, %50 : vector<8x128xf32>
    %c0_7 = arith.constant 0 : index
    %c0_8 = arith.constant 0 : index
    %53 = vector.load %arg5[%c0_7, %c0_8] : memref<8x128xf32, #tpu.memory_space<vmem>>, vector<8x128xf32>
    tpu.vector_store %arg5[%c0_7, %c0_8], %52 {strides = array<i32>} : memref<8x128xf32, #tpu.memory_space<vmem>>, vector<8x128xf32>,
    return
  }
  func.func @transform_0(%arg0: i32, %arg1: memref<7xf32, #tpu.memory_space<smem>>, %arg2: memref<1xf32, #tpu.memory_space<smem>>) -> (i32, i32) {
    %c0_i32 = arith.constant 0 : i32
    %c0_i32_0 = arith.constant 0 : i32
    return %arg0, %c0_i32 : i32, i32
  }
  func.func @transform_1(%arg0: i32, %arg1: memref<7xf32, #tpu.memory_space<smem>>, %arg2: memref<1xf32, #tpu.memory_space<smem>>) -> (i32, i32) {
    %c0_i32 = arith.constant 0 : i32
    %c0_i32_0 = arith.constant 0 : i32
    return %arg0, %c0_i32 : i32, i32
  }
  func.func @transform_2(%arg0: i32, %arg1: memref<7xf32, #tpu.memory_space<smem>>, %arg2: memref<1xf32, #tpu.memory_space<smem>>) -> (i32, i32) {
    %c0_i32 = arith.constant 0 : i32
    %c0_i32_0 = arith.constant 0 : i32
    return %arg0, %c0_i32 : i32, i32
  }
}

</mosaic_0001>

<bundles_post_ra>
// kernel: _mod_forward_impl.1
= control target key start
LH: loop header
LB: loop body
LE: loop exit
PB: predicated region body
PF: predicated region fallthrough
CT: control target
= control target key end

     0   :  { %s147_s18 = smov [#allocation3]   ;;  %s194_s0 = inlined_call_operand.vmem [shape: f32[7], index: 0, kind: input, shape index: {}]   ;;  %s195_s1 = inlined_call_operand.<no memory space> [shape: f32[1], index: 1, kind: input, shape index: {}]   ;;  %s196_s2 = inlined_call_operand.vmem [shape: f32[8,128], index: 2, kind: input, shape index: {}]   ;;  %s197_s3 = inlined_call_operand.vmem [shape: f32[8,128], index: 3, kind: input, shape index: {}]   ;;  %s198_s4 = inlined_call_operand.vmem [shape: f32[8,128], index: 4, kind: output, shape index: {}]  }
   0x1   :  { %s10_s17 = sshll.u32 %s194_s0, 4  ;;  %s11_s17 = int_to_ptr.vmem [resolvable:$true] %s10_s17 }
   0x2   :  { %13 = dma.vmem_to_smem %s11_s17, 16, %s147_s18, [#allocation2] }
   0x3   :  { %145 = dma.done.wait [#allocation2], 16 }
   0x4   :  { %146 = vsyncadd [#allocation2], 4294967280 }
   0x5   :  { %17 = sfence }
   0x6   :  { %v22_v0 = vld [vmem:[%s196_s2] sm:$0xff]  ;;  %s148_s21 = smov 126   ;;  %s149_s22 = smov 127   ;;  %v34_v5 = vlaneseq  ;;  %v28_v12 = vstv %s195_s1 }
   0x7   :  { %42 = vrot.lane.b32.xlu1 %v22_v0, %s148_s21  ;;  %30 = vrot.lane.b32.xlu0 %v22_v0, %s149_s22  ;;  %s150_s23 = smov 125   ;;  %v23_v1 = vld [vmem:[%s197_s3] sm:$0xff]  ;;  %s151_s0 = smov 124  }
   0x8   :  { %52 = vrot.lane.b32.xlu2 %v22_v0, %s150_s23  ;;  %s152_s26 = smov 123   ;;  %s153_s2 = smov 122   ;;  %v35_v6 = vand.u32 127, %v34_v5 }
   0x9   :  { %s24_s27 = sld [smem:[#allocation3]] }
   0xa   :  { %s116_s28 = sld [smem:[#allocation3 + $0x1]]  ;;  %vm36_vm0 = vcmp.lt.s32.totalorder %v35_v6, 127  ;;  %vm46_vm1 = vcmp.lt.s32.totalorder %v35_v6, 126  ;;  %vm56_vm2 = vcmp.lt.s32.totalorder %v35_v6, 125  ;;  %vm66_vm3 = vcmp.lt.s32.totalorder %v35_v6, 124 }
   0xb   :  { %s117_s3 = sld [smem:[#allocation3 + $0x2]]  ;;  %vm76_vm4 = vcmp.lt.s32.totalorder %v35_v6, 123  ;;  %vm86_vm5 = vcmp.lt.s32.totalorder %v35_v6, 122 }
   0xc   :  { %s118_s5 = sld [smem:[#allocation3 + $0x3]] }
   0xd   :  { %s119_s6 = sld [smem:[#allocation3 + $0x4]] }
   0xe   :  { %s120_s7 = sld [smem:[#allocation3 + $0x5]] }
   0xf   :  { %44 = vrot.lane.b32.xlu1 %v23_v1, %s148_s21  ;;  %32 = vrot.lane.b32.xlu0 %v23_v1, %s149_s22  ;;  %v25_v8 = vstv %s24_s27  ;;  %s121_s8 = sld [smem:[#allocation3 + $0x6]] }
  0x10   :  { %54 = vrot.lane.b32.xlu2 %v23_v1, %s150_s23  ;;  %v26_v11 = vmul.f32 %v25_v8, %v22_v0  ;;  %v39_v13 = vstv %s116_s28 }
  0x11   :  { %v49_v18 = vstv %s117_s3 }
  0x12   :  { %v29_v15 = vadd.f32 %v28_v12, %v26_v11  ;;  %v59_v24 = vstv %s118_s5 }
  0x13   :  { %v69_v26 = vstv %s119_s6 }
  0x14   :  { %v79_v32 = vstv %s120_s7 }
  0x15   :  { %v89_v33 = vstv %s121_s8 }
  0x17   :  { %64 = vrot.lane.b32.xlu1 %v23_v1, %s151_s0  ;;  %62 = vrot.lane.b32.xlu0 %v22_v0, %s151_s0 }
  0x18   :  { %72 = vrot.lane.b32.xlu2 %v22_v0, %s152_s26 }
  0x1f   :  { %74 = vrot.lane.b32.xlu0 %v23_v1, %s152_s26  ;;  %82 = vrot.lane.b32.xlu1 %v22_v0, %s153_s2 }
  0x20   :  { %84 = vrot.lane.b32.xlu2 %v23_v1, %s153_s2 }
  0x62   :  { %v53_v2 = vpop.permute.xlu2 %52 }
  0x6a   :  { %v55_v7 = vpop.permute.xlu2 %54 }
  0x6b   :  { %v57_v25 = vsel %vm56_vm2, %v53_v2, %v55_v7 }
  0x6c   :  { %v60_v29 = vmul.f32 %v59_v24, %v57_v25 }
  0x72   :  { %v73_v17 = vpop.permute.xlu2 %72 }
  0x79   :  { %v43_v3 = vpop.permute.xlu1 %42  ;;  %v31_v4 = vpop.permute.xlu0 %30 }
  0x7a   :  { %v85_v31 = vpop.permute.xlu2 %84 }
  0x81   :  { %v45_v9 = vpop.permute.xlu1 %44  ;;  %v33_v10 = vpop.permute.xlu0 %32 }
  0x82   :  { %v37_v14 = vsel %vm36_vm0, %v31_v4, %v33_v10  ;;  %v47_v19 = vsel %vm46_vm1, %v43_v3, %v45_v9 }
  0x83   :  { %v40_v16 = vmul.f32 %v39_v13, %v37_v14  ;;  %v50_v23 = vmul.f32 %v49_v18, %v47_v19 }
  0x85   :  { %v41_v20 = vadd.f32 %v40_v16, %v29_v15 }
  0x87   :  { %v51_v28 = vadd.f32 %v50_v23, %v41_v20 }
  0x89   :  { %v65_v21 = vpop.permute.xlu1 %64  ;;  %v63_v22 = vpop.permute.xlu0 %62  ;;  %v61_v34 = vadd.f32 %v60_v29, %v51_v28 }
  0x8a   :  { %v67_v27 = vsel %vm66_vm3, %v63_v22, %v65_v21 }
  0x8b   :  { %v70_v30 = vmul.f32 %v69_v26, %v67_v27 }
  0x8d   :  { %v71_v39 = vadd.f32 %v70_v30, %v61_v34 }
  0x91   :  { %v75_v35 = vpop.permute.xlu0 %74  ;;  %v83_v36 = vpop.permute.xlu1 %82 }
  0x92   :  { %v77_v37 = vsel %vm76_vm4, %v73_v17, %v75_v35  ;;  %v87_v38 = vsel %vm86_vm5, %v83_v36, %v85_v31 }
  0x93   :  { %v80_v40 = vmul.f32 %v79_v32, %v77_v37  ;;  %v90_v41 = vmul.f32 %v89_v33, %v87_v38 }
  0x95   :  { %v81_v42 = vadd.f32 %v80_v40, %v71_v39 }
  0x97   :  { %v91_v43 = vadd.f32 %v90_v41, %v81_v42 }
  0x99   :  { %v92_v44 = vsub.f32 0.0, %v91_v43 }
  0x9b   :  { %v93_v45 = vmul.f32 1.442695, %v92_v44 }
  0x9d   :  { %129 = vpow2.f32 %v93_v45 }
  0xa3   :  { %v130_v46 = vpop.eup %129 }
  0xa4   :  { %v95_v47 = vadd.f32 1.0, %v130_v46 }
  0xa6   :  { %131 = vrcp.f32 %v95_v47  ;;  %v107_v51 = vand.u32 2147483648, %v95_v47  ;;  %v105_v53 = vand.u32 2147483647, %v95_v47  ;;  %vm101_vm7 = vweird.f32 %v95_v47 }
  0xa8   :  { %v108_v55 = vor.u32 1.1754944e-38, %v107_v51  ;;  %vm106_vm9 = vcmp.eq.f32.partialorder %v105_v53, 8.507059e+37 }
  0xac   :  { %v132_v48 = vpop.eup %131 }
  0xad   :  { %v97_v49 = vmul.f32 %v132_v48, %v95_v47  ;;  %vm102_vm6 = vweird.f32 %v132_v48 }
  0xae   :  { %vm103_vm8 = vmor %vm101_vm7, %vm102_vm6 }
  0xaf   :  { %v98_v50 = vsub.f32 1.0, %v97_v49 }
  0xb1   :  { %v99_v52 = vmul.f32 %v132_v48, %v98_v50 }
  0xb3   :  { %v100_v54 = vadd.f32 %v132_v48, %v99_v52 }
  0xb5   :  { %v104_v56 = vsel %vm103_vm8, %v132_v48, %v100_v54 }
  0xb6   :  { %v109_v57 = vsel %vm106_vm9, %v108_v55, %v104_v56 }
  0xb7   :  { %111 = vst [vmem:[%s198_s4] sm:$0xff] %v109_v57 }

</bundles_post_ra>
